<compile_context>
chip_gen: v7x
topology: tpu7x:2x2x1
jax: 0.10.0
libtpu: 0.0.40
codegen_flags: <defaults>
</compile_context>

<pallas_src>
import functools

import jax
import jax.numpy as jnp
from jax.experimental import pallas as pl
from jax.experimental.pallas import tpu as pltpu

# ------------------- static configuration (image_size must be divisible by 4) ---------
IMAGE_SIZE = 16          # small, but consistent with the module
NUM_CLASSES = 3
C1, C2 = 16, 32          # conv1 / conv2 output channels
FC1_OUT = 64

H = W = IMAGE_SIZE
Ho, Wo = H // 2, W // 2              # after pool1   (8, 8)
Hq, Wq = Ho // 2, Wo // 2            # after pool2   (4, 4)
LN1 = Wo * C1                        # conv1 activation lane width  (128)
LN2 = Wq * C2                        # conv2 activation lane width  (128)
OPAD = 128                           # fc1 units padded to a full lane tile
CPAD = 128                           # logits padded to a full lane tile (sliced in glue)


def _round_up(x, m):
    return (x + m - 1) // m * m


# --------------------------------------------------------------------------------------
# Fused, batched Pallas kernel (B_TILE images per grid step; everything stays in vregs)
# Row ordering inside one block (built by _build_conv1_lhs):
#   conv1 LHS row index = q*(2*Hq*B) + par*(Hq*B) + j*B + b
#   for conv1-output row r = 4*j + 2*par + q of image b  (q = row-within-pool,
#   par = parity of pooled row, j = pooled-row / 2).  This makes every pooling /
#   im2col step a contiguous, tile-aligned row-block or 128-lane slice.
# --------------------------------------------------------------------------------------
def _ohlc_fused_kernel(a_ref, t1_ref, b1_ref, t2_ref, b2_ref,
                       wf1_ref, bf1_ref, wf2_ref, bf2_ref, o_ref):
    bt = a_ref.shape[0] // H                     # images in this grid step (multiple of 8)

    # ------------------ conv1 + bias + relu + 2x2 maxpool -----------------------------
    z1 = jnp.dot(a_ref[...], t1_ref[...],
                 preferred_element_type=jnp.float32)                  # (bt*H, 2*LN1)
    zq = jnp.maximum(z1[0:bt * Ho, :], z1[bt * Ho:bt * H, :])         # max over 2 pool rows
    zw = jnp.maximum(zq[:, 0:LN1], zq[:, LN1:2 * LN1])                # max over 2 pool cols
    # relu(max(conv) + b) == maxpool(relu(conv + b))  (shared bias, monotone relu)
    y1 = jnp.maximum(zw + b1_ref[...], 0.0).astype(jnp.bfloat16)      # (bt*Ho, LN1), rows (par, j, b)

    # ------------------ conv2: in-register im2col + one bf16 MXU matmul ----------------
    ev = y1[0:bt * Hq, :]                         # pooled conv1 rows 0,2,4,6  (j, b)
    od = y1[bt * Hq:bt * Ho, :]                   # pooled conv1 rows 1,3,5,7  (j, b)
    zpad = jnp.zeros((bt, LN1), jnp.bfloat16)
    od_m = jnp.concatenate([zpad, od[0:bt * (Hq - 1), :]], axis=0)    # rows -1,1,3,5 (top pad)
    ev_p = jnp.concatenate([ev[bt:bt * Hq, :], zpad], axis=0)         # rows  2,4,6,8 (bottom pad)
    patches = jnp.concatenate(
        [jnp.concatenate([od_m, ev, od], axis=1),      # even conv2 rows 0,2,4,6
         jnp.concatenate([ev, od, ev_p], axis=1)],     # odd  conv2 rows 1,3,5,7
        axis=0)                                        # (2*Hq*bt, 3*LN1) bf16
    z2 = jnp.dot(patches, t2_ref[...],
                 preferred_element_type=jnp.float32)                  # (2*Hq*bt, 2*LN2)
    z2h = jnp.maximum(z2[0:bt * Hq, :], z2[bt * Hq:2 * bt * Hq, :])   # pool over rows
    z2w = jnp.maximum(z2h[:, 0:LN2], z2h[:, LN2:2 * LN2])             # pool over cols
    y2 = jnp.maximum(z2w + b2_ref[...], 0.0).astype(jnp.bfloat16)     # (bt*Hq, LN2), rows (u, b)

    # ------------------ fc1 (Hq accumulating dense matmuls) + relu + fc2 ---------------
    h = jnp.dot(y2[0:bt, :], wf1_ref[0:LN2, :],
                preferred_element_type=jnp.float32)                   # (bt, OPAD)
    for u in range(1, Hq):
        h = h + jnp.dot(y2[u * bt:(u + 1) * bt, :],
                        wf1_ref[u * LN2:(u + 1) * LN2, :],
                        preferred_element_type=jnp.float32)
    h = jnp.maximum(h + bf1_ref[...], 0.0).astype(jnp.bfloat16)       # (bt, OPAD)
    # TODO(synk): nn.Dropout(0.5) is identity in eval mode; training-mode dropout
    # (pltpu.prng_random_bits mask) is not implemented here.
    o_ref[...] = jnp.dot(h, wf2_ref[...],
                         preferred_element_type=jnp.float32) + bf2_ref[...]   # (bt, CPAD)


# --------------------------------------------------------------------------------------
# One-time weight re-layout (hoisted out of the jitted forward path)
# --------------------------------------------------------------------------------------
def prepare_params(params):
    w1 = params["conv1_w"]            # (C1, 1, 3, 3)
    w2 = params["conv2_w"]            # (C2, C1, 3, 3)
    wf1 = params["fc1_w"]             # (FC1_OUT, C2*Hq*Wq)
    wf2 = params["fc2_w"]             # (NUM_CLASSES, FC1_OUT)

    # conv1 Toeplitz: T1[dy*W + wx, pc*LN1 + v*C1 + c1] = w1[c1, 0, dy, wx - (2v+pc) + 1]
    w1t = w1[:, 0, :, :]                                   # (C1, 3, 3)
    dy = jnp.arange(3)[:, None, None, None, None]
    wx = jnp.arange(W)[None, :, None, None, None]
    pc = jnp.arange(2)[None, None, :, None, None]
    v = jnp.arange(Wo)[None, None, None, :, None]
    c1 = jnp.arange(C1)[None, None, None, None, :]
    dx = wx - 2 * v - pc + 1
    t1 = jnp.where((dx >= 0) & (dx <= 2), w1t[c1, dy, jnp.clip(dx, 0, 2)], 0.0)
    t1 = t1.reshape(3 * W, 2 * LN1).astype(jnp.bfloat16)

    # conv2 Toeplitz: T2[dy*LN1 + wi*C1 + c1, pc*LN2 + v*C2 + c2]
    #                 = w2[c2, c1, dy, wi - (2v+pc) + 1]
    dy = jnp.arange(3)[:, None, None, None, None, None]
    wi = jnp.arange(Wo)[None, :, None, None, None, None]
    c1 = jnp.arange(C1)[None, None, :, None, None, None]
    pc = jnp.arange(2)[None, None, None, :, None, None]
    v = jnp.arange(Wq)[None, None, None, None, :, None]
    c2 = jnp.arange(C2)[None, None, None, None, None, :]
    dx = wi - 2 * v - pc + 1
    t2 = jnp.where((dx >= 0) & (dx <= 2), w2[c2, c1, dy, jnp.clip(dx, 0, 2)], 0.0)
    t2 = t2.reshape(3 * LN1, 2 * LN2).astype(jnp.bfloat16)

    # fc1: absorb torch's NCHW flatten order into a dense (Hq*LN2, OPAD) layout where
    # row = u*LN2 + (v*C2 + c2) (u = pooled row), col = padded fc1 unit.  The kernel
    # does Hq accumulating (B, LN2) @ (LN2, OPAD) matmuls — no block-diagonal padding.
    row = jnp.arange(Hq * LN2)[:, None]
    col = jnp.arange(OPAD)[None, :]
    u_i, lane = row // LN2, row % LN2
    v_i, c2_i = lane // C2, lane % C2
    torch_col = c2_i * (Hq * Wq) + u_i * Wq + v_i
    wf1_big = jnp.where(col < FC1_OUT,
                        wf1[jnp.minimum(col, FC1_OUT - 1), torch_col], 0.0)
    wf1_big = wf1_big.astype(jnp.bfloat16)            # (Hq*LN2, OPAD)

    b1t = jnp.tile(params["conv1_b"].astype(jnp.float32), Wo)[None, :]        # (1, LN1)
    b2t = jnp.tile(params["conv2_b"].astype(jnp.float32), Wq)[None, :]        # (1, LN2)
    bf1 = jnp.zeros((1, OPAD), jnp.float32).at[0, :FC1_OUT].set(params["fc1_b"])
    wf2_p = jnp.zeros((OPAD, CPAD), jnp.float32).at[:FC1_OUT, :NUM_CLASSES].set(wf2.T)
    bf2 = jnp.zeros((1, CPAD), jnp.float32).at[0, :NUM_CLASSES].set(params["fc2_b"])

    return {"t1": t1, "b1t": b1t, "t2": t2, "b2t": b2t,
            "wf1": wf1_big, "bf1": bf1,
            "wf2": wf2_p.astype(jnp.bfloat16), "bf2": bf2}


def _build_conv1_lhs(x_img, bt):
    """x_img: (N_pad, H, W), N_pad % bt == 0.  Returns (N_pad*H, 3W) bf16 with rows
    grouped per bt-image block and ordered (q, par, j, image): conv1-output row
    r = 4j + 2par + q, each row holding its 3 (zero-padded) input rows on lanes."""
    n_pad = x_img.shape[0]
    g = n_pad // bt
    xpr = jnp.pad(x_img, ((0, 0), (1, 1), (0, 0)))                    # (N_pad, H+2, W)
    ridx = jnp.arange(H)[:, None] + jnp.arange(3)[None, :]            # (H, 3)
    taps = xpr[:, ridx, :].reshape(n_pad, H, 3 * W)                   # (N_pad, H, 3W)
    taps = taps.reshape(g, bt, Hq, 2, 2, 3 * W)                       # (g, b, j, par, q, :)
    a = jnp.transpose(taps, (0, 4, 3, 2, 1, 5))                       # (g, q, par, j, b, :)
    return a.reshape(n_pad * H, 3 * W).astype(jnp.bfloat16)


# --------------------------------------------------------------------------------------
# Forward wrapper
# --------------------------------------------------------------------------------------
@functools.partial(jax.jit, static_argnames=("b_tile",))
def ohlc_cnn_forward(x_nchw, prep, b_tile=32):
    """x_nchw: (N, 1, H, W) f32 -> logits (N, NUM_CLASSES)."""
    n = x_nchw.shape[0]
    bt = max(8, min(_round_up(n, 8), _round_up(b_tile, 8)))   # images per grid step
    n_pad = _round_up(n, bt)

    x_img = x_nchw[:, 0, :, :]
    if n_pad != n:
        x_img = jnp.pad(x_img, ((0, n_pad - n), (0, 0), (0, 0)))
    a = _build_conv1_lhs(x_img, bt)                           # (N_pad*H, 3W) bf16

    per_image_mults = (H * (3 * W) * (2 * LN1)
                       + (2 * Hq) * (3 * LN1) * (2 * LN2)
                       + Hq * LN2 * OPAD
                       + OPAD * CPAD)
    flops = int(2 * n_pad * per_image_mults)
    bytes_accessed = int(n_pad * H * 3 * W * 2
                         + (3 * W * 2 * LN1 + 3 * LN1 * 2 * LN2
                            + Hq * LN2 * OPAD + OPAD * CPAD) * 2
                         + (LN1 + LN2 + OPAD + CPAD) * 4
                         + n_pad * CPAD * 4)

    out = pl.pallas_call(
        _ohlc_fused_kernel,
        out_shape=jax.ShapeDtypeStruct((n_pad, CPAD), jnp.float32),
        grid_spec=pltpu.PrefetchScalarGridSpec(
            num_scalar_prefetch=0,
            grid=(n_pad // bt,),
            in_specs=[
                pl.BlockSpec((bt * H, 3 * W), lambda i: (i, 0)),       # batched conv1 LHS
                pl.BlockSpec((3 * W, 2 * LN1), lambda i: (0, 0)),      # conv1 Toeplitz weights
                pl.BlockSpec((1, LN1), lambda i: (0, 0)),              # conv1 bias (lane-tiled)
                pl.BlockSpec((3 * LN1, 2 * LN2), lambda i: (0, 0)),    # conv2 Toeplitz weights
                pl.BlockSpec((1, LN2), lambda i: (0, 0)),              # conv2 bias (lane-tiled)
                pl.BlockSpec((Hq * LN2, OPAD), lambda i: (0, 0)),      # fc1 weights (per-u stacked)
                pl.BlockSpec((1, OPAD), lambda i: (0, 0)),             # fc1 bias (padded)
                pl.BlockSpec((OPAD, CPAD), lambda i: (0, 0)),          # fc2 weights (padded)
                pl.BlockSpec((1, CPAD), lambda i: (0, 0)),             # fc2 bias (padded)
            ],
            out_specs=pl.BlockSpec((bt, CPAD), lambda i: (i, 0)),
        ),
        compiler_params=pltpu.CompilerParams(
            dimension_semantics=("parallel",),
        ),
        cost_estimate=pl.CostEstimate(flops=flops, transcendentals=0,
                                      bytes_accessed=bytes_accessed),
    )(a, prep["t1"], prep["b1t"], prep["t2"], prep["b2t"],
      prep["wf1"], prep["bf1"], prep["wf2"], prep["bf2"])
    return out[:n, :NUM_CLASSES]


# --------------------------------------------------------------------------------------
# Pure-JAX reference (correctness sanity check only)
# --------------------------------------------------------------------------------------
def ref_forward(x_nchw, params):
    x = jnp.transpose(x_nchw, (0, 2, 3, 1))
    for wgt, b in [(params["conv1_w"], params["conv1_b"]),
                   (params["conv2_w"], params["conv2_b"])]:
        y = jax.lax.conv_general_dilated(
            x, jnp.transpose(wgt, (2, 3, 1, 0)), (1, 1), "SAME",
            dimension_numbers=("NHWC", "HWIO", "NHWC"),
            precision=jax.lax.Precision.HIGHEST)
        y = jax.nn.relu(y + b)
        x = jax.lax.reduce_window(y, -jnp.inf, jax.lax.max,
                                  (1, 2, 2, 1), (1, 2, 2, 1), "VALID")
    xf = jnp.transpose(x, (0, 3, 1, 2)).reshape(x.shape[0], -1)
    hh = jax.nn.relu(xf @ params["fc1_w"].T + params["fc1_b"])
    return hh @ params["fc2_w"].T + params["fc2_b"]


# --------------------------------------------------------------------------------------
if __name__ == "__main__":
    key = jax.random.PRNGKey(0)
    ks = jax.random.split(key, 10)

    N = 2
    flat = C2 * Hq * Wq                      # == _flattened_size for image_size=16

    x = jax.random.normal(ks[0], (N, 1, H, W), jnp.float32)
    params = {
        "conv1_w": 0.20 * jax.random.normal(ks[1], (C1, 1, 3, 3), jnp.float32),
        "conv1_b": 0.10 * jax.random.normal(ks[2], (C1,), jnp.float32),
        "conv2_w": 0.05 * jax.random.normal(ks[3], (C2, C1, 3, 3), jnp.float32),
        "conv2_b": 0.05 * jax.random.normal(ks[4], (C2,), jnp.float32),
        "fc1_w":   0.05 * jax.random.normal(ks[5], (FC1_OUT, flat), jnp.float32),
        "fc1_b":   0.05 * jax.random.normal(ks[6], (FC1_OUT,), jnp.float32),
        "fc2_w":   0.05 * jax.random.normal(ks[7], (NUM_CLASSES, FC1_OUT), jnp.float32),
        "fc2_b":   0.05 * jax.random.normal(ks[8], (NUM_CLASSES,), jnp.float32),
    }

    prep = prepare_params(params)            # one-time weight re-layout (outside jit)

    logits = jax.block_until_ready(ohlc_cnn_forward(x, prep))
    assert logits.shape == (N, NUM_CLASSES)

    ref = jax.block_until_ready(ref_forward(x, params))
    # bf16 MXU operands (f32 accumulation) in all layers -> relaxed tolerance vs f32 ref.
    assert jnp.allclose(logits, ref, atol=2e-2, rtol=2e-2), (logits, ref)

    print("KERNEL_OK")
</pallas_src>

<mosaic_0001>
module attributes {stable_mosaic.version = 11 : i64} {
  func.func @_ohlc_fused_kernel(%arg0: i32, %arg1: memref<128x48xbf16, #tpu.memory_space<vmem>>, %arg2: memref<48x256xbf16, #tpu.memory_space<vmem>>, %arg3: memref<1x128xf32, #tpu.memory_space<vmem>>, %arg4: memref<384x256xbf16, #tpu.memory_space<vmem>>, %arg5: memref<1x128xf32, #tpu.memory_space<vmem>>, %arg6: memref<512x128xbf16, #tpu.memory_space<vmem>>, %arg7: memref<1x128xf32, #tpu.memory_space<vmem>>, %arg8: memref<128x128xbf16, #tpu.memory_space<vmem>>, %arg9: memref<1x128xf32, #tpu.memory_space<vmem>>, %arg10: memref<8x128xf32, #tpu.memory_space<vmem>>) attributes {dimension_semantics = [#tpu.dimension_semantics<parallel>], iteration_bounds = array<i64: 1>, scalar_prefetch = 0 : i64, scratch_operands = 0 : i64, tpu.core_type = #tpu.core_type<tc>, window_params = [{transform_indices = @transform_0, window_bounds = array<i64: 128, 48>}, {pipeline_mode = #tpu.pipeline_mode<synchronous>, transform_indices = @transform_1, window_bounds = array<i64: 48, 256>}, {pipeline_mode = #tpu.pipeline_mode<synchronous>, transform_indices = @transform_2, window_bounds = array<i64: 1, 128>}, {pipeline_mode = #tpu.pipeline_mode<synchronous>, transform_indices = @transform_3, window_bounds = array<i64: 384, 256>}, {pipeline_mode = #tpu.pipeline_mode<synchronous>, transform_indices = @transform_4, window_bounds = array<i64: 1, 128>}, {pipeline_mode = #tpu.pipeline_mode<synchronous>, transform_indices = @transform_5, window_bounds = array<i64: 512, 128>}, {pipeline_mode = #tpu.pipeline_mode<synchronous>, transform_indices = @transform_6, window_bounds = array<i64: 1, 128>}, {pipeline_mode = #tpu.pipeline_mode<synchronous>, transform_indices = @transform_7, window_bounds = array<i64: 128, 128>}, {pipeline_mode = #tpu.pipeline_mode<synchronous>, transform_indices = @transform_8, window_bounds = array<i64: 1, 128>}, {transform_indices = @transform_9, window_bounds = array<i64: 8, 128>}]} {
    %c0 = arith.constant 0 : index
    %c0_0 = arith.constant 0 : index
    %0 = vector.load %arg1[%c0, %c0_0] : memref<128x48xbf16, #tpu.memory_space<vmem>>, vector<128x48xbf16>
    %c0_1 = arith.constant 0 : index
    %c0_2 = arith.constant 0 : index
    %1 = vector.load %arg2[%c0_1, %c0_2] : memref<48x256xbf16, #tpu.memory_space<vmem>>, vector<48x256xbf16>
    %cst = arith.constant dense<0.000000e+00> : vector<128x256xf32>
    %2 = tpu.matmul %0, %1, %cst {dimension_numbers = #tpu.dot_dimension_numbers<[1], [0], [0], [1], [0, 0, 1, 1], [], []>} : vector<128x48xbf16>, vector<48x256xbf16>, vector<128x256xf32> -> vector<128x256xf32>
    %3 = vector.extract_strided_slice %2 {offsets = [0, 0], sizes = [64, 256], strides = [1, 1]} : vector<128x256xf32> to vector<64x256xf32>
    %4 = vector.extract_strided_slice %2 {offsets = [64, 0], sizes = [64, 256], strides = [1, 1]} : vector<128x256xf32> to vector<64x256xf32>
    %5 = arith.maximumf %3, %4 : vector<64x256xf32>
    %6 = vector.extract_strided_slice %5 {offsets = [0, 0], sizes = [64, 128], strides = [1, 1]} : vector<64x256xf32> to vector<64x128xf32>
    %7 = vector.extract_strided_slice %5 {offsets = [0, 128], sizes = [64, 128], strides = [1, 1]} : vector<64x256xf32> to vector<64x128xf32>
    %8 = arith.maximumf %6, %7 : vector<64x128xf32>
    %c0_3 = arith.constant 0 : index
    %c0_4 = arith.constant 0 : index
    %9 = vector.load %arg3[%c0_3, %c0_4] : memref<1x128xf32, #tpu.memory_space<vmem>>, vector<1x128xf32>
    %10 = vector.broadcast %9 : vector<1x128xf32> to vector<64x128xf32>
    %11 = arith.addf %8, %10 : vector<64x128xf32>
    %cst_5 = arith.constant 0.000000e+00 : f32
    %12 = vector.broadcast %cst_5 : f32 to vector<64x128xf32>
    %13 = arith.maximumf %11, %12 : vector<64x128xf32>
    %14 = arith.truncf %13 : vector<64x128xf32> to vector<64x128xbf16>
    %15 = vector.extract_strided_slice %14 {offsets = [0, 0], sizes = [32, 128], strides = [1, 1]} : vector<64x128xbf16> to vector<32x128xbf16>
    %16 = vector.extract_strided_slice %14 {offsets = [32, 0], sizes = [32, 128], strides = [1, 1]} : vector<64x128xbf16> to vector<32x128xbf16>
    %cst_6 = arith.constant 0.000000e+00 : bf16
    %17 = vector.broadcast %cst_6 : bf16 to vector<8x128xbf16>
    %18 = vector.extract_strided_slice %16 {offsets = [0, 0], sizes = [24, 128], strides = [1, 1]} : vector<32x128xbf16> to vector<24x128xbf16>
    %19 = tpu.concatenate %17, %18 in 0 : vector<8x128xbf16>, vector<24x128xbf16> -> vector<32x128xbf16>
    %20 = vector.extract_strided_slice %15 {offsets = [8, 0], sizes = [24, 128], strides = [1, 1]} : vector<32x128xbf16> to vector<24x128xbf16>
    %21 = tpu.concatenate %20, %17 in 0 : vector<24x128xbf16>, vector<8x128xbf16> -> vector<32x128xbf16>
    %22 = tpu.concatenate %19, %15, %16 in 1 : vector<32x128xbf16>, vector<32x128xbf16>, vector<32x128xbf16> -> vector<32x384xbf16>
    %23 = tpu.concatenate %15, %16, %21 in 1 : vector<32x128xbf16>, vector<32x128xbf16>, vector<32x128xbf16> -> vector<32x384xbf16>
    %24 = tpu.concatenate %22, %23 in 0 : vector<32x384xbf16>, vector<32x384xbf16> -> vector<64x384xbf16>
    %c0_7 = arith.constant 0 : index
    %c0_8 = arith.constant 0 : index
    %25 = vector.load %arg4[%c0_7, %c0_8] : memref<384x256xbf16, #tpu.memory_space<vmem>>, vector<384x256xbf16>
    %cst_9 = arith.constant dense<0.000000e+00> : vector<64x256xf32>
    %26 = tpu.matmul %24, %25, %cst_9 {dimension_numbers = #tpu.dot_dimension_numbers<[1], [0], [0], [1], [0, 0, 1, 1], [], []>} : vector<64x384xbf16>, vector<384x256xbf16>, vector<64x256xf32> -> vector<64x256xf32>
    %27 = vector.extract_strided_slice %26 {offsets = [0, 0], sizes = [32, 256], strides = [1, 1]} : vector<64x256xf32> to vector<32x256xf32>
    %28 = vector.extract_strided_slice %26 {offsets = [32, 0], sizes = [32, 256], strides = [1, 1]} : vector<64x256xf32> to vector<32x256xf32>
    %29 = arith.maximumf %27, %28 : vector<32x256xf32>
    %30 = vector.extract_strided_slice %29 {offsets = [0, 0], sizes = [32, 128], strides = [1, 1]} : vector<32x256xf32> to vector<32x128xf32>
    %31 = vector.extract_strided_slice %29 {offsets = [0, 128], sizes = [32, 128], strides = [1, 1]} : vector<32x256xf32> to vector<32x128xf32>
    %32 = arith.maximumf %30, %31 : vector<32x128xf32>
    %c0_10 = arith.constant 0 : index
    %c0_11 = arith.constant 0 : index
    %33 = vector.load %arg5[%c0_10, %c0_11] : memref<1x128xf32, #tpu.memory_space<vmem>>, vector<1x128xf32>
    %34 = vector.broadcast %33 : vector<1x128xf32> to vector<32x128xf32>
    %35 = arith.addf %32, %34 : vector<32x128xf32>
    %cst_12 = arith.constant 0.000000e+00 : f32
    %36 = vector.broadcast %cst_12 : f32 to vector<32x128xf32>
    %37 = arith.maximumf %35, %36 : vector<32x128xf32>
    %38 = arith.truncf %37 : vector<32x128xf32> to vector<32x128xbf16>
    %39 = vector.extract_strided_slice %38 {offsets = [0, 0], sizes = [8, 128], strides = [1, 1]} : vector<32x128xbf16> to vector<8x128xbf16>
    %c0_13 = arith.constant 0 : index
    %c0_14 = arith.constant 0 : index
    %40 = vector.load %arg6[%c0_13, %c0_14] : memref<512x128xbf16, #tpu.memory_space<vmem>>, vector<128x128xbf16>
    %cst_15 = arith.constant dense<0.000000e+00> : vector<8x128xf32>
    %41 = tpu.matmul %39, %40, %cst_15 {dimension_numbers = #tpu.dot_dimension_numbers<[1], [0], [0], [1], [0, 0, 1, 1], [], []>} : vector<8x128xbf16>, vector<128x128xbf16>, vector<8x128xf32> -> vector<8x128xf32>
    %42 = vector.extract_strided_slice %38 {offsets = [8, 0], sizes = [8, 128], strides = [1, 1]} : vector<32x128xbf16> to vector<8x128xbf16>
    %c128 = arith.constant 128 : index
    %c0_16 = arith.constant 0 : index
    %43 = vector.load %arg6[%c128, %c0_16] : memref<512x128xbf16, #tpu.memory_space<vmem>>, vector<128x128xbf16>
    %cst_17 = arith.constant dense<0.000000e+00> : vector<8x128xf32>
    %44 = tpu.matmul %42, %43, %cst_17 {dimension_numbers = #tpu.dot_dimension_numbers<[1], [0], [0], [1], [0, 0, 1, 1], [], []>} : vector<8x128xbf16>, vector<128x128xbf16>, vector<8x128xf32> -> vector<8x128xf32>
    %45 = arith.addf %41, %44 : vector<8x128xf32>
    %46 = vector.extract_strided_slice %38 {offsets = [16, 0], sizes = [8, 128], strides = [1, 1]} : vector<32x128xbf16> to vector<8x128xbf16>
    %c256 = arith.constant 256 : index
    %c0_18 = arith.constant 0 : index
    %47 = vector.load %arg6[%c256, %c0_18] : memref<512x128xbf16, #tpu.memory_space<vmem>>, vector<128x128xbf16>
    %cst_19 = arith.constant dense<0.000000e+00> : vector<8x128xf32>
    %48 = tpu.matmul %46, %47, %cst_19 {dimension_numbers = #tpu.dot_dimension_numbers<[1], [0], [0], [1], [0, 0, 1, 1], [], []>} : vector<8x128xbf16>, vector<128x128xbf16>, vector<8x128xf32> -> vector<8x128xf32>
    %49 = arith.addf %45, %48 : vector<8x128xf32>
    %50 = vector.extract_strided_slice %38 {offsets = [24, 0], sizes = [8, 128], strides = [1, 1]} : vector<32x128xbf16> to vector<8x128xbf16>
    %c384 = arith.constant 384 : index
    %c0_20 = arith.constant 0 : index
    %51 = vector.load %arg6[%c384, %c0_20] : memref<512x128xbf16, #tpu.memory_space<vmem>>, vector<128x128xbf16>
    %cst_21 = arith.constant dense<0.000000e+00> : vector<8x128xf32>
    %52 = tpu.matmul %50, %51, %cst_21 {dimension_numbers = #tpu.dot_dimension_numbers<[1], [0], [0], [1], [0, 0, 1, 1], [], []>} : vector<8x128xbf16>, vector<128x128xbf16>, vector<8x128xf32> -> vector<8x128xf32>
    %53 = arith.addf %49, %52 : vector<8x128xf32>
    %c0_22 = arith.constant 0 : index
    %c0_23 = arith.constant 0 : index
    %54 = vector.load %arg7[%c0_22, %c0_23] : memref<1x128xf32, #tpu.memory_space<vmem>>, vector<1x128xf32>
    %55 = vector.broadcast %54 : vector<1x128xf32> to vector<8x128xf32>
    %56 = arith.addf %53, %55 : vector<8x128xf32>
    %cst_24 = arith.constant 0.000000e+00 : f32
    %57 = vector.broadcast %cst_24 : f32 to vector<8x128xf32>
    %58 = arith.maximumf %56, %57 : vector<8x128xf32>
    %59 = arith.truncf %58 : vector<8x128xf32> to vector<8x128xbf16>
    %c0_25 = arith.constant 0 : index
    %c0_26 = arith.constant 0 : index
    %60 = vector.load %arg8[%c0_25, %c0_26] : memref<128x128xbf16, #tpu.memory_space<vmem>>, vector<128x128xbf16>
    %cst_27 = arith.constant dense<0.000000e+00> : vector<8x128xf32>
    %61 = tpu.matmul %59, %60, %cst_27 {dimension_numbers = #tpu.dot_dimension_numbers<[1], [0], [0], [1], [0, 0, 1, 1], [], []>} : vector<8x128xbf16>, vector<128x128xbf16>, vector<8x128xf32> -> vector<8x128xf32>
    %c0_28 = arith.constant 0 : index
    %c0_29 = arith.constant 0 : index
    %62 = vector.load %arg9[%c0_28, %c0_29] : memref<1x128xf32, #tpu.memory_space<vmem>>, vector<1x128xf32>
    %63 = vector.broadcast %62 : vector<1x128xf32> to vector<8x128xf32>
    %64 = arith.addf %61, %63 : vector<8x128xf32>
    %c0_30 = arith.constant 0 : index
    %c0_31 = arith.constant 0 : index
    %65 = vector.load %arg10[%c0_30, %c0_31] : memref<8x128xf32, #tpu.memory_space<vmem>>, vector<8x128xf32>
    tpu.vector_store %arg10[%c0_30, %c0_31], %64 {strides = array<i32>} : memref<8x128xf32, #tpu.memory_space<vmem>>, vector<8x128xf32>,
    return
  }
  func.func @transform_0(%arg0: i32) -> (i32, i32) {
    %c0_i32 = arith.constant 0 : i32
    %c0_i32_0 = arith.constant 0 : i32
    return %arg0, %c0_i32 : i32, i32
  }
  func.func @transform_1(%arg0: i32) -> (i32, i32) {
    %c0_i32 = arith.constant 0 : i32
    %c0_i32_0 = arith.constant 0 : i32
    %c0_i32_1 = arith.constant 0 : i32
    return %c0_i32, %c0_i32_0 : i32, i32
  }
  func.func @transform_2(%arg0: i32) -> (i32, i32) {
    %c0_i32 = arith.constant 0 : i32
    %c0_i32_0 = arith.constant 0 : i32
    %c0_i32_1 = arith.constant 0 : i32
    return %c0_i32, %c0_i32_0 : i32, i32
  }
  func.func @transform_3(%arg0: i32) -> (i32, i32) {
    %c0_i32 = arith.constant 0 : i32
    %c0_i32_0 = arith.constant 0 : i32
    %c0_i32_1 = arith.constant 0 : i32
    return %c0_i32, %c0_i32_0 : i32, i32
  }
  func.func @transform_4(%arg0: i32) -> (i32, i32) {
    %c0_i32 = arith.constant 0 : i32
    %c0_i32_0 = arith.constant 0 : i32
    %c0_i32_1 = arith.constant 0 : i32
    return %c0_i32, %c0_i32_0 : i32, i32
  }
  func.func @transform_5(%arg0: i32) -> (i32, i32) {
    %c0_i32 = arith.constant 0 : i32
    %c0_i32_0 = arith.constant 0 : i32
    %c0_i32_1 = arith.constant 0 : i32
    return %c0_i32, %c0_i32_0 : i32, i32
  }
  func.func @transform_6(%arg0: i32) -> (i32, i32) {
    %c0_i32 = arith.constant 0 : i32
    %c0_i32_0 = arith.constant 0 : i32
    %c0_i32_1 = arith.constant 0 : i32
    return %c0_i32, %c0_i32_0 : i32, i32
  }
  func.func @transform_7(%arg0: i32) -> (i32, i32) {
    %c0_i32 = arith.constant 0 : i32
    %c0_i32_0 = arith.constant 0 : i32
    %c0_i32_1 = arith.constant 0 : i32
    return %c0_i32, %c0_i32_0 : i32, i32
  }
  func.func @transform_8(%arg0: i32) -> (i32, i32) {
    %c0_i32 = arith.constant 0 : i32
    %c0_i32_0 = arith.constant 0 : i32
    %c0_i32_1 = arith.constant 0 : i32
    return %c0_i32, %c0_i32_0 : i32, i32
  }
  func.func @transform_9(%arg0: i32) -> (i32, i32) {
    %c0_i32 = arith.constant 0 : i32
    %c0_i32_0 = arith.constant 0 : i32
    return %arg0, %c0_i32 : i32, i32
  }
}

</mosaic_0001>

<bundles_post_ra>
// kernel: ohlc_cnn_forward.1
= control target key start
LH: loop header
LB: loop body
LE: loop exit
PB: predicated region body
PF: predicated region fallthrough
CT: control target
= control target key end

     0   :  { %v1758_v1 = vmov 0   ;;  %vm125_vm0 = vcmask 392192   ;;  %v1759_v48 = vmov 0.0   ;;  %vm316_vm1 = vcmask 1043456   ;;  %s2235_s1 = inlined_call_operand.vmem [shape: bf16[48,256], index: 1, kind: input, shape index: {}]   ;;  %s2236_s0 = inlined_call_operand.vmem [shape: bf16[128,48], index: 0, kind: input, shape index: {}]   ;;  %s2237_s3 = inlined_call_operand.vmem [shape: bf16[384,256], index: 3, kind: input, shape index: {}]   ;;  %s2238_s5 = inlined_call_operand.vmem [shape: bf16[512,128], index: 5, kind: input, shape index: {}]   ;;  %s2239_s2 = inlined_call_operand.vmem [shape: f32[1,128], index: 2, kind: input, shape index: {}]   ;;  %s2240_s4 = inlined_call_operand.vmem [shape: f32[1,128], index: 4, kind: input, shape index: {}]   ;;  %s2241_s7 = inlined_call_operand.vmem [shape: bf16[128,128], index: 7, kind: input, shape index: {}]   ;;  %s2242_s6 = inlined_call_operand.vmem [shape: f32[1,128], index: 6, kind: input, shape index: {}]   ;;  %s2243_s8 = inlined_call_operand.vmem [shape: f32[1,128], index: 8, kind: input, shape index: {}]   ;;  %s2244_s9 = inlined_call_operand.vmem [shape: f32[8,128], index: 9, kind: output, shape index: {}]  }
   0x1   :  { %v1629_v0 = vld [vmem:[%s2235_s1 + $0x4] ss:$8 sps:$4 sm:$0xff]   ;;  %182 = vmatprep.mubr.bf16.mxu0 %v1758_v1  ;;  %v1631_v2 = vld [vmem:[%s2235_s1] ss:$8 sps:$4 sm:$0xff]   ;;  %v1632_v3 = vld [vmem:[%s2235_s1 + $0x14] ss:$8 sps:$4 sm:$0xff]  }
   0x2   :  { %150 = vmatprep.subr.bf16.mxu0 %v1629_v0  ;;  %v1634_v4 = vld [vmem:[%s2235_s1 + $0x10] ss:$8 sps:$4 sm:$0xff]   ;;  %v1635_v5 = vld [vmem:[%s2235_s1 + $0x24] ss:$8 sps:$4 sm:$0xff]   ;;  %v1637_v6 = vld [vmem:[%s2235_s1 + $0x20] ss:$8 sps:$4 sm:$0xff]  }
   0x3   :  { %151 = vmatpush1.bf16.msra.mxu0 %v1631_v2  ;;  %v1638_v7 = vld [vmem:[%s2236_s0] sm:$0xff]   ;;  %v1639_v8 = vld [vmem:[%s2236_s0 + $0x8] sm:$0xff]   ;;  %v1640_v9 = vld [vmem:[%s2236_s0 + $0x10] sm:$0xff]   ;;  %vm1760_vm3 = vmmov 0  }
   0x4   :  { %152 = vmatprep.subr.bf16.mxu0 %v1632_v3  ;;  %v1641_v10 = vld [vmem:[%s2236_s0 + $0x18] sm:$0xff]   ;;  %v1642_v11 = vld [vmem:[%s2236_s0 + $0x20] sm:$0xff]   ;;  %v1643_v12 = vld [vmem:[%s2236_s0 + $0x28] sm:$0xff]  }
   0x5   :  { %v1644_v13 = vld [vmem:[%s2236_s0 + $0x30] sm:$0xff]   ;;  %v1645_v14 = vld [vmem:[%s2236_s0 + $0x38] sm:$0xff]   ;;  %v1646_v15 = vld [vmem:[%s2237_s3 + $0x4] ss:$8 sps:$4 sm:$0xff]  }
   0x6   :  { %v1648_v16 = vld [vmem:[%s2237_s3] ss:$8 sps:$4 sm:$0xff]   ;;  %623 = vmatprep.subr.bf16.mxu1 %v1646_v15  ;;  %v1649_v17 = vld [vmem:[%s2237_s3 + $0x14] ss:$8 sps:$4 sm:$0xff]   ;;  %v1651_v18 = vld [vmem:[%s2237_s3 + $0x10] ss:$8 sps:$4 sm:$0xff]  }
   0x7   :  { %153 = vmatpush1.bf16.msra.mxu0 %v1634_v4  ;;  %624 = vmatpush1.bf16.msra.mxu1 %v1648_v16  ;;  %v1652_v19 = vld [vmem:[%s2237_s3 + $0x24] ss:$8 sps:$4 sm:$0xff]   ;;  %v1654_v20 = vld [vmem:[%s2237_s3 + $0x20] ss:$8 sps:$4 sm:$0xff]   ;;  %v1655_v21 = vld [vmem:[%s2237_s3 + $0x34] ss:$8 sps:$4 sm:$0xff]  }
   0x8   :  { %154 = vmatprep.subr.bf16.mxu0 %v1635_v5  ;;  %625 = vmatprep.subr.bf16.mxu1 %v1649_v17  ;;  %v1657_v22 = vld [vmem:[%s2237_s3 + $0x30] ss:$8 sps:$4 sm:$0xff]   ;;  %v1658_v23 = vld [vmem:[%s2237_s3 + $0x44] ss:$8 sps:$4 sm:$0xff]   ;;  %v1660_v24 = vld [vmem:[%s2237_s3 + $0x40] ss:$8 sps:$4 sm:$0xff]  }
   0x9   :  { %v1661_v25 = vld [vmem:[%s2237_s3 + $0x54] ss:$8 sps:$4 sm:$0xff]   ;;  %v1663_v26 = vld [vmem:[%s2237_s3 + $0x50] ss:$8 sps:$4 sm:$0xff]   ;;  %v1664_v27 = vld [vmem:[%s2237_s3 + $0x64] ss:$8 sps:$4 sm:$0xff]  }
   0xa   :  { %v1666_v28 = vld [vmem:[%s2237_s3 + $0x60] ss:$8 sps:$4 sm:$0xff]   ;;  %v1667_v29 = vld [vmem:[%s2237_s3 + $0x74] ss:$8 sps:$4 sm:$0xff]   ;;  %v1669_v30 = vld [vmem:[%s2237_s3 + $0x70] ss:$8 sps:$4 sm:$0xff]  }
   0xb   :  { %155 = vmatpush1.bf16.msra.mxu0 %v1637_v6  ;;  %626 = vmatpush1.bf16.msra.mxu1 %v1651_v18  ;;  %v1670_v31 = vld [vmem:[%s2237_s3 + $0x84] ss:$8 sps:$4 sm:$0xff]   ;;  %v1672_v32 = vld [vmem:[%s2237_s3 + $0x80] ss:$8 sps:$4 sm:$0xff]   ;;  %v1673_v33 = vld [vmem:[%s2237_s3 + $0x94] ss:$8 sps:$4 sm:$0xff]  }
   0xc   :  { %627 = vmatprep.subr.bf16.mxu1 %v1652_v19  ;;  %v1675_v34 = vld [vmem:[%s2237_s3 + $0x90] ss:$8 sps:$4 sm:$0xff]   ;;  %v1676_v35 = vld [vmem:[%s2237_s3 + $0xa4] ss:$8 sps:$4 sm:$0xff]   ;;  %v1678_v36 = vld [vmem:[%s2237_s3 + $0xa0] ss:$8 sps:$4 sm:$0xff]   ;;  %1510 = vmatprep.subr.bf16.mxu0 %v1759_v48 }
   0xd   :  { %v1679_v37 = vld [vmem:[%s2237_s3 + $0xb4] ss:$8 sps:$4 sm:$0xff]   ;;  %v1681_v38 = vld [vmem:[%s2237_s3 + $0xb0] ss:$8 sps:$4 sm:$0xff]   ;;  %v1682_v39 = vld [vmem:[%s2237_s3 + $0xc4] ss:$8 sps:$4 sm:$0xff]  }
   0xe   :  { %1362 = vmatmul.mubr.msk.bf16.vlgmr.msra.gmra.mrb[0].mxu0 %vm125_vm0, %v1638_v7  ;;  %v1684_v40 = vld [vmem:[%s2237_s3 + $0xc0] ss:$8 sps:$4 sm:$0xff]   ;;  %v1685_v41 = vld [vmem:[%s2237_s3 + $0xd4] ss:$8 sps:$4 sm:$0xff]   ;;  %v1687_v42 = vld [vmem:[%s2237_s3 + $0xd0] ss:$8 sps:$4 sm:$0xff]  }
   0xf   :  { %192 = vmatprep.mubr.bf16.mxu0 %v1758_v1  ;;  %628 = vmatpush1.bf16.msra.mxu1 %v1654_v20  ;;  %v1688_v43 = vld [vmem:[%s2237_s3 + $0xe4] ss:$8 sps:$4 sm:$0xff]   ;;  %v1690_v44 = vld [vmem:[%s2237_s3 + $0xe0] ss:$8 sps:$4 sm:$0xff]   ;;  %v1691_v45 = vld [vmem:[%s2237_s3 + $0xf4] ss:$8 sps:$4 sm:$0xff]  }
  0x10   :  { %629 = vmatprep.subr.bf16.mxu1 %v1655_v21  ;;  %v1693_v46 = vld [vmem:[%s2237_s3 + $0xf0] ss:$8 sps:$4 sm:$0xff]   ;;  %v1696_v47 = vld [vmem:[%s2237_s3 + $0x104] ss:$8 sps:$4 sm:$0xff]   ;;  %vm1419_vm2 = vmneg %vm316_vm1 }
  0x11   :  { %v1718_v49 = vld [vmem:[%s2238_s5 + $0x40] sm:$0xff]   ;;  %v1719_v50 = vld [vmem:[%s2238_s5 + $0x48] sm:$0xff]   ;;  %v1720_v52 = vld [vmem:[%s2238_s5 + $0x50] sm:$0xff]  }
  0x12   :  { %1511 = vmatpush3.bf16.msra.mxu0 %v1718_v49  ;;  %v1721_v56 = vld [vmem:[%s2238_s5 + $0x58] sm:$0xff]  }
  0x13   :  { %630 = vmatpush1.bf16.msra.mxu1 %v1657_v22  ;;  %1512 = vmatprep.subr.bf16.mxu0 %v1759_v48 }
  0x14   :  { %631 = vmatprep.subr.bf16.mxu1 %v1658_v23 }
  0x16   :  { %1363 = vmatmul.mubr.msk.bf16.gmra.mrb[4].mxu0 %vm125_vm0, %v1639_v8 }
  0x17   :  { %202 = vmatprep.mubr.bf16.mxu0 %v1758_v1  ;;  %632 = vmatpush1.bf16.msra.mxu1 %v1660_v24 }
  0x18   :  { %633 = vmatprep.subr.bf16.mxu1 %v1661_v25  ;;  %1513 = vmatpush3.bf16.msra.mxu0 %v1719_v50 }
  0x19   :  { %1514 = vmatprep.subr.bf16.mxu0 %v1759_v48 }
  0x1b   :  { %634 = vmatpush1.bf16.msra.mxu1 %v1663_v26 }
  0x1c   :  { %635 = vmatprep.subr.bf16.mxu1 %v1664_v27  ;;  %1515 = vmatpush3.bf16.msra.mxu0 %v1720_v52 }
  0x1d   :  { %1516 = vmatprep.subr.bf16.mxu0 %v1759_v48 }
  0x1e   :  { %1364 = vmatmul.mubr.msk.bf16.gmra.mrb[8].mxu0 %vm125_vm0, %v1640_v9 }
  0x1f   :  { %212 = vmatprep.mubr.bf16.mxu0 %v1758_v1  ;;  %636 = vmatpush1.bf16.msra.mxu1 %v1666_v28 }
  0x20   :  { %637 = vmatprep.subr.bf16.mxu1 %v1667_v29  ;;  %1517 = vmatpush3.bf16.msra.mxu0 %v1721_v56 }
  0x21   :  { %1518 = vmatprep.subr.bf16.mxu0 %v1759_v48 }
  0x23   :  { %638 = vmatpush1.bf16.msra.mxu1 %v1669_v30 }
  0x24   :  { %639 = vmatprep.subr.bf16.mxu1 %v1670_v31 }
  0x26   :  { %1365 = vmatmul.mubr.msk.bf16.gmra.mrb[12].mxu0 %vm125_vm0, %v1641_v10 }
  0x27   :  { %222 = vmatprep.mubr.bf16.mxu0 %v1758_v1  ;;  %640 = vmatpush1.bf16.msra.mxu1 %v1672_v32 }
  0x28   :  { %641 = vmatprep.subr.bf16.mxu1 %v1673_v33 }
  0x2b   :  { %642 = vmatpush1.bf16.msra.mxu1 %v1675_v34 }
  0x2c   :  { %643 = vmatprep.subr.bf16.mxu1 %v1676_v35 }
  0x2e   :  { %1366 = vmatmul.mubr.msk.bf16.gmra.mrb[16].mxu0 %vm125_vm0, %v1642_v11  ;;  %v1370_v11 = vld [vmem:[%s2239_s2] ss:$0 sm:$0xff] }
  0x2f   :  { %232 = vmatprep.mubr.bf16.mxu0 %v1758_v1  ;;  %644 = vmatpush1.bf16.msra.mxu1 %v1678_v36 }
  0x30   :  { %645 = vmatprep.subr.bf16.mxu1 %v1679_v37 }
  0x33   :  { %646 = vmatpush1.bf16.msra.mxu1 %v1681_v38 }
  0x34   :  { %647 = vmatprep.subr.bf16.mxu1 %v1682_v39 }
  0x36   :  { %1367 = vmatmul.mubr.msk.bf16.gmra.mrb[20].mxu0 %vm125_vm0, %v1643_v12 }
  0x37   :  { %242 = vmatprep.mubr.bf16.mxu0 %v1758_v1  ;;  %648 = vmatpush1.bf16.msra.mxu1 %v1684_v40 }
  0x38   :  { %649 = vmatprep.subr.bf16.mxu1 %v1685_v41 }
  0x3b   :  { %650 = vmatpush1.bf16.msra.mxu1 %v1687_v42 }
  0x3c   :  { %651 = vmatprep.subr.bf16.mxu1 %v1688_v43 }
  0x3e   :  { %1368 = vmatmul.mubr.msk.bf16.gmra.mrb[24].mxu0 %vm125_vm0, %v1644_v13 }
  0x3f   :  { %252 = vmatprep.mubr.bf16.mxu0 %v1758_v1  ;;  %652 = vmatpush1.bf16.msra.mxu1 %v1690_v44 }
  0x40   :  { %653 = vmatprep.subr.bf16.mxu1 %v1691_v45 }
  0x43   :  { %654 = vmatpush1.bf16.msra.mxu1 %v1693_v46 }
  0x44   :  { %696 = vmatprep.subr.bf16.mxu1 %v1696_v47 }
  0x46   :  { %1369 = vmatmul.mubr.msk.bf16.gmra.mrb[28].mxu0 %vm125_vm0, %v1645_v14 }
  0x47   :  { %1526 = vmatprep.mubr.msk.bf16.mxu0 %vm1760_vm3, %v1759_v48 }
  0xe1   :  { %v184_v51 = vpop.f32.mrb[0].mxu0 }
  0xe2   :  { %v186_v53 = vpop.f32.mrb[1].mxu0 }
  0xe3   :  { %v188_v54 = vpop.f32.mrb[2].mxu0 }
  0xe4   :  { %v190_v55 = vpop.f32.mrb[3].mxu0 }
  0xe9   :  { %v194_v57 = vpop.f32.mrb[4].mxu0 }
  0xea   :  { %v196_v58 = vpop.f32.mrb[5].mxu0 }
  0xeb   :  { %v198_v59 = vpop.f32.mrb[6].mxu0 }
  0xec   :  { %v200_v60 = vpop.f32.mrb[7].mxu0 }
  0xf1   :  { %v204_v61 = vpop.f32.mrb[8].mxu0 }
  0xf2   :  { %v206_v62 = vpop.f32.mrb[9].mxu0 }
  0xf3   :  { %v208_v63 = vpop.f32.mrb[10].mxu0 }
  0xf4   :  { %v210_v0 = vpop.f32.mrb[11].mxu0 }
  0xf9   :  { %v1985_v2 = vpop.f32.mrb[12].mxu0 }
  0xfa   :  { %v1987_v3 = vpop.f32.mrb[13].mxu0 }
  0xfb   :  { %v1989_v4 = vpop.f32.mrb[14].mxu0 }
  0xfc   :  { %v1991_v5 = vpop.f32.mrb[15].mxu0 }
 0x101   :  { %v224_v6 = vpop.f32.mrb[16].mxu0 }
 0x102   :  { %v263_v7 = vmax.f32 %v184_v51, %v224_v6  ;;  %v226_v8 = vpop.f32.mrb[17].mxu0  ;;  %v1694_v6 = vld [vmem:[%s2237_s3 + $0x100] ss:$8 sps:$4 sm:$0xff]  }
 0x103   :  { %v264_v9 = vmax.f32 %v186_v53, %v226_v8  ;;  %v228_v10 = vpop.f32.mrb[18].mxu0 }
 0x104   :  { %v265_v12 = vmax.f32 %v188_v54, %v228_v10  ;;  %v230_v13 = vpop.f32.mrb[19].mxu0 }
 0x105   :  { %v279_v14 = vmax.f32 %v263_v7, %v264_v9  ;;  %v266_v15 = vmax.f32 %v190_v55, %v230_v13 }
 0x107   :  { %v294_v16 = vadd.f32 %v1370_v11, %v279_v14  ;;  %v280_v17 = vmax.f32 %v265_v12, %v266_v15  ;;  %v1702_v12 = vld [vmem:[%s2237_s3 + $0x124] ss:$8 sps:$4 sm:$0xff]   ;;  %v1705_v15 = vld [vmem:[%s2237_s3 + $0x134] ss:$8 sps:$4 sm:$0xff]  }
 0x109   :  { %v295_v18 = vadd.f32 %v1370_v11, %v280_v17  ;;  %v234_v19 = vpop.f32.mrb[20].mxu0  ;;  %v302_v22 = vmax.f32 %v294_v16, 0.0  ;;  %v1703_v17 = vld [vmem:[%s2237_s3 + $0x130] ss:$8 sps:$4 sm:$0xff]  }
 0x10a   :  { %v267_v20 = vmax.f32 %v194_v57, %v234_v19  ;;  %v236_v21 = vpop.f32.mrb[21].mxu0  ;;  %v1706_v19 = vld [vmem:[%s2237_s3 + $0x140] ss:$8 sps:$4 sm:$0xff]  }
 0x10b   :  { %v303_v23 = vmax.f32 %v295_v18, 0.0  ;;  %v268_v24 = vmax.f32 %v196_v58, %v236_v21  ;;  %v238_v25 = vpop.f32.mrb[22].mxu0  ;;  %v1708_v18 = vld [vmem:[%s2237_s3 + $0x144] ss:$8 sps:$4 sm:$0xff]   ;;  %v1709_v21 = vld [vmem:[%s2237_s3 + $0x150] ss:$8 sps:$4 sm:$0xff]  }
 0x10c   :  { %v269_v26 = vmax.f32 %v198_v59, %v238_v25  ;;  %v240_v27 = vpop.f32.mrb[23].mxu0  ;;  %v1715_v25 = vld [vmem:[%s2237_s3 + $0x170] ss:$8 sps:$4 sm:$0xff]  }
 0x10d   :  { %v281_v28 = vmax.f32 %v267_v20, %v268_v24  ;;  %v270_v29 = vmax.f32 %v200_v60, %v240_v27  ;;  %v1996_v30 = vpack.c.bf16 %v303_v23, %v302_v22  ;;  %v1711_v20 = vld [vmem:[%s2237_s3 + $0x154] ss:$8 sps:$4 sm:$0xff]   ;;  %v1714_v22 = vld [vmem:[%s2237_s3 + $0x164] ss:$8 sps:$4 sm:$0xff]   ;;  %v1712_v23 = vld [vmem:[%s2237_s3 + $0x160] ss:$8 sps:$4 sm:$0xff]  }
 0x10e   :  { %v1717_v24 = vld [vmem:[%s2237_s3 + $0x174] ss:$8 sps:$4 sm:$0xff]   ;;  %v1723_v27 = vld [vmem:[%s2238_s5 + $0x80] sm:$0xff]  }
 0x10f   :  { %v296_v31 = vadd.f32 %v1370_v11, %v281_v28  ;;  %v282_v32 = vmax.f32 %v269_v26, %v270_v29  ;;  %655 = vmatprep.mubr.bf16.mxu1 %v1996_v30  ;;  %v328_v49 = vrot.slane %v1996_v30, 4  ;;  %v1722_v26 = vld [vmem:[%s2238_s5 + $0x60] sm:$0xff]   ;;  %v1725_v28 = vld [vmem:[%s2238_s5 + $0x88] sm:$0xff]   ;;  %v1726_v29 = vld [vmem:[%s2238_s5 + $0x90] sm:$0xff]  }
 0x110   :  { %1519 = vmatpush3.bf16.msra.mxu0 %v1722_v26  ;;  %v1745_v26 = vld [vmem:[%s2238_s5 + $0xd8] sm:$0xff]  }
 0x111   :  { %v297_v33 = vadd.f32 %v1370_v11, %v282_v32  ;;  %v244_v34 = vpop.f32.mrb[24].mxu0  ;;  %v304_v37 = vmax.f32 %v296_v31, 0.0  ;;  %1520 = vmatprep.subr.bf16.mxu0 %v1759_v48  ;;  %v1728_v31 = vld [vmem:[%s2238_s5 + $0x98] sm:$0xff]   ;;  %v1729_v32 = vld [vmem:[%s2238_s5 + $0xa0] sm:$0xff]  }
 0x112   :  { %v271_v35 = vmax.f32 %v204_v61, %v244_v34  ;;  %v246_v36 = vpop.f32.mrb[25].mxu0  ;;  %v1730_v34 = vld [vmem:[%s2238_s5 + $0x78] sm:$0xff]  }
 0x113   :  { %v305_v38 = vmax.f32 %v297_v33, 0.0  ;;  %v272_v39 = vmax.f32 %v206_v62, %v246_v36  ;;  %v248_v40 = vpop.f32.mrb[26].mxu0  ;;  %v1731_v33 = vld [vmem:[%s2238_s5 + $0xa8] sm:$0xff]   ;;  %v1734_v36 = vld [vmem:[%s2238_s5 + $0xb8] sm:$0xff]  }
 0x114   :  { %v273_v41 = vmax.f32 %v208_v63, %v248_v40  ;;  %v250_v42 = vpop.f32.mrb[27].mxu0 }
 0x115   :  { %v283_v43 = vmax.f32 %v271_v35, %v272_v39  ;;  %v274_v44 = vmax.f32 %v210_v0, %v250_v42  ;;  %v1999_v45 = vpack.c.bf16 %v305_v38, %v304_v37  ;;  %v1732_v35 = vld [vmem:[%s2238_s5 + $0xb0] sm:$0xff]  }
 0x117   :  { %v298_v46 = vadd.f32 %v1370_v11, %v283_v43  ;;  %v284_v47 = vmax.f32 %v273_v41, %v274_v44  ;;  %v329_v50 = vrot.slane %v1999_v45, 4 }
 0x119   :  { %v299_v51 = vadd.f32 %v1370_v11, %v284_v47  ;;  %v254_v52 = vpop.f32.mrb[28].mxu0  ;;  %v2006_v53 = vsel %vm316_vm1, %v328_v49, %v329_v50  ;;  %v306_v56 = vmax.f32 %v298_v46, 0.0 }
 0x11a   :  { %v275_v54 = vmax.f32 %v1985_v2, %v254_v52  ;;  %v256_v55 = vpop.f32.mrb[29].mxu0 }
 0x11b   :  { %v307_v57 = vmax.f32 %v299_v51, 0.0  ;;  %v276_v58 = vmax.f32 %v1987_v3, %v256_v55  ;;  %v258_v59 = vpop.f32.mrb[30].mxu0  ;;  %v1699_v3 = vld [vmem:[%s2237_s3 + $0x114] ss:$8 sps:$4 sm:$0xff]   ;;  %v1422_v51 = vld [vmem:[%s2240_s4] ss:$0 sm:$0xff] }
 0x11c   :  { %v277_v60 = vmax.f32 %v1989_v4, %v258_v59  ;;  %v260_v61 = vpop.f32.mrb[31].mxu0  ;;  %v1697_v4 = vld [vmem:[%s2237_s3 + $0x110] ss:$8 sps:$4 sm:$0xff]  }
 0x11d   :  { %v312_v62 = vpack.c.bf16 %v307_v57, %v306_v56  ;;  %v285_v63 = vmax.f32 %v275_v54, %v276_v58  ;;  %v278_v0 = vmax.f32 %v1991_v5, %v260_v61 }
 0x11f   :  { %v300_v2 = vadd.f32 %v1370_v11, %v285_v63  ;;  %v286_v7 = vmax.f32 %v277_v60, %v278_v0  ;;  %v317_v8 = vrot.slane %v312_v62, 4 }
 0x121   :  { %v301_v9 = vadd.f32 %v1370_v11, %v286_v7  ;;  %1420 = vmatmul.mubr.msk.bf16.vlgmr.msra.gmra.mrb[0].mxu1 %vm1419_vm2, %v317_v8  ;;  %v308_v5 = vmax.f32 %v300_v2, 0.0  ;;  %v1700_v11 = vld [vmem:[%s2237_s3 + $0x120] ss:$8 sps:$4 sm:$0xff]  }
 0x122   :  { %665 = vmatprep.mubr.bf16.mxu1 %v1999_v45  ;;  %697 = vmatpush1.bf16.msra.mxu1 %v1694_v6 }
 0x123   :  { %v309_v10 = vmax.f32 %v301_v9, 0.0  ;;  %698 = vmatprep.subr.bf16.mxu1 %v1699_v3 }
 0x125   :  { %v313_v13 = vpack.c.bf16 %v309_v10, %v308_v5 }
 0x126   :  { %699 = vmatpush1.bf16.msra.mxu1 %v1697_v4  ;;  %v1733_v4 = vld [vmem:[%s2238_s5] sm:$0xff]  }
 0x127   :  { %700 = vmatprep.subr.bf16.mxu1 %v1702_v12  ;;  %v318_v14 = vrot.slane %v313_v13, 4 }
 0x129   :  { %v319_v16 = vsel %vm316_vm1, %v317_v8, %v318_v14 }
 0x12a   :  { %666 = vmatmul.mubr.bf16.gmra.mrb[4].mxu1 %v319_v16 }
 0x12b   :  { %701 = vmatpush1.bf16.msra.mxu1 %v1700_v11  ;;  %675 = vmatprep.mubr.bf16.mxu1 %v312_v62  ;;  %v1735_v11 = vld [vmem:[%s2238_s5 + $0x8] sm:$0xff]  }
 0x12c   :  { %702 = vmatprep.subr.bf16.mxu1 %v1705_v15 }
 0x12f   :  { %703 = vmatpush1.bf16.msra.mxu1 %v1703_v17  ;;  %v1736_v17 = vld [vmem:[%s2238_s5 + $0x10] sm:$0xff]  }
 0x130   :  { %704 = vmatprep.subr.bf16.mxu1 %v1708_v18  ;;  %v1737_v18 = vld [vmem:[%s2238_s5 + $0x18] sm:$0xff]  }
 0x132   :  { %676 = vmatmul.mubr.bf16.gmra.mrb[8].mxu1 %v1996_v30  ;;  %v1727_v30 = vld [vmem:[%s2238_s5 + $0x70] sm:$0xff]  }
 0x133   :  { %705 = vmatpush1.bf16.msra.mxu1 %v1706_v19  ;;  %685 = vmatprep.mubr.bf16.mxu1 %v313_v13  ;;  %v1738_v19 = vld [vmem:[%s2238_s5 + $0x20] sm:$0xff]  }
 0x134   :  { %706 = vmatprep.subr.bf16.mxu1 %v1711_v20  ;;  %v1739_v20 = vld [vmem:[%s2238_s5 + $0x28] sm:$0xff]  }
 0x137   :  { %707 = vmatpush1.bf16.msra.mxu1 %v1709_v21  ;;  %v1740_v21 = vld [vmem:[%s2238_s5 + $0x30] sm:$0xff]  }
 0x138   :  { %708 = vmatprep.subr.bf16.mxu1 %v1714_v22  ;;  %v1741_v22 = vld [vmem:[%s2238_s5 + $0x38] sm:$0xff]  }
 0x13a   :  { %686 = vmatmul.mubr.bf16.gmra.mrb[12].mxu1 %v1999_v45 }
 0x13b   :  { %709 = vmatpush1.bf16.msra.mxu1 %v1712_v23  ;;  %728 = vmatprep.mubr.bf16.mxu1 %v1758_v1  ;;  %v1742_v23 = vld [vmem:[%s2238_s5 + $0xc0] sm:$0xff]  }
 0x13c   :  { %710 = vmatprep.subr.bf16.mxu1 %v1717_v24  ;;  %v1743_v24 = vld [vmem:[%s2238_s5 + $0xc8] sm:$0xff]  }
 0x13f   :  { %711 = vmatpush1.bf16.msra.mxu1 %v1715_v25  ;;  %v1744_v25 = vld [vmem:[%s2238_s5 + $0xd0] sm:$0xff]  }
 0x140   :  { %1550 = vmatprep.subr.bf16.mxu1 %v1759_v48 }
 0x142   :  { %729 = vmatmul.mubr.bf16.vlgmr.msra.gmra.mrb[0].mxu1 %v312_v62 }
 0x143   :  { %738 = vmatprep.mubr.bf16.mxu1 %v1758_v1  ;;  %1551 = vmatpush3.bf16.msra.mxu1 %v1723_v27  ;;  %v1746_v27 = vld [vmem:[%s2238_s5 + $0xe0] sm:$0xff]  }
 0x144   :  { %1552 = vmatprep.subr.bf16.mxu1 %v1759_v48 }
 0x147   :  { %1553 = vmatpush3.bf16.msra.mxu1 %v1725_v28  ;;  %v1748_v28 = vld [vmem:[%s2238_s5 + $0xf0] sm:$0xff]  }
 0x148   :  { %1554 = vmatprep.subr.bf16.mxu1 %v1759_v48 }
 0x14a   :  { %739 = vmatmul.mubr.bf16.gmra.mrb[4].mxu1 %v313_v13 }
 0x14b   :  { %748 = vmatprep.mubr.bf16.mxu1 %v1758_v1  ;;  %1555 = vmatpush3.bf16.msra.mxu1 %v1726_v29  ;;  %v1749_v29 = vld [vmem:[%s2238_s5 + $0xf8] sm:$0xff]  }
 0x14c   :  { %1556 = vmatprep.subr.bf16.mxu1 %v1759_v48 }
 0x14f   :  { %1557 = vmatpush3.bf16.msra.mxu1 %v1728_v31  ;;  %v1750_v31 = vld [vmem:[%s2241_s7] sm:$0xff]  }
 0x150   :  { %1558 = vmatprep.subr.bf16.mxu1 %v1759_v48 }
 0x152   :  { %749 = vmatmul.mubr.bf16.gmra.mrb[8].mxu1 %v2006_v53 }
 0x153   :  { %758 = vmatprep.mubr.bf16.mxu1 %v1758_v1  ;;  %v1724_v1 = vld [vmem:[%s2238_s5 + $0x68] sm:$0xff]   ;;  %1559 = vmatpush3.bf16.msra.mxu1 %v1729_v32 }
 0x154   :  { %1521 = vmatpush3.bf16.msra.mxu0 %v1724_v1  ;;  %1560 = vmatprep.subr.bf16.mxu1 %v1759_v48  ;;  %v1747_v1 = vld [vmem:[%s2238_s5 + $0xe8] sm:$0xff]  }
 0x155   :  { %1522 = vmatprep.subr.bf16.mxu0 %v1759_v48  ;;  %v1751_v32 = vld [vmem:[%s2241_s7 + $0x8] sm:$0xff]  }
 0x157   :  { %1561 = vmatpush3.bf16.msra.mxu1 %v1731_v33  ;;  %v1752_v33 = vld [vmem:[%s2241_s7 + $0x10] sm:$0xff]  }
 0x158   :  { %1523 = vmatpush3.bf16.msra.mxu0 %v1727_v30  ;;  %1562 = vmatprep.subr.bf16.mxu1 %v1759_v48 }
 0x159   :  { %1524 = vmatprep.subr.bf16.mxu0 %v1759_v48 }
 0x15a   :  { %1421 = vmatmul.mubr.msk.bf16.gmra.mrb[12].mxu1 %vm316_vm1, %v329_v50 }
 0x15b   :  { %1563 = vmatpush3.bf16.msra.mxu1 %v1732_v35  ;;  %1566 = vmatprep.mubr.msk.bf16.mxu1 %vm1760_vm3, %v1759_v48  ;;  %v1754_v35 = vld [vmem:[%s2241_s7 + $0x20] sm:$0xff]  }
 0x15c   :  { %1525 = vmatpush3.bf16.msra.mxu0 %v1730_v34  ;;  %1564 = vmatprep.subr.bf16.mxu1 %v1759_v48  ;;  %v1753_v34 = vld [vmem:[%s2241_s7 + $0x18] sm:$0xff]  }
 0x15d   :  { %1530 = vmatprep.subr.bf16.mxu0 %v1759_v48 }
 0x15f   :  { %1565 = vmatpush3.bf16.msra.mxu1 %v1734_v36  ;;  %v1755_v36 = vld [vmem:[%s2241_s7 + $0x28] sm:$0xff]  }
 0x160   :  { %1590 = vmatprep.subr.bf16.mxu1 %v1759_v48 }
 0x215   :  { %v730_v37 = vpop.f32.mrb[0].mxu1 }
 0x216   :  { %v732_v38 = vpop.f32.mrb[1].mxu1 }
 0x217   :  { %v734_v39 = vpop.f32.mrb[2].mxu1 }
 0x218   :  { %v736_v40 = vpop.f32.mrb[3].mxu1 }
 0x21d   :  { %v740_v41 = vpop.f32.mrb[4].mxu1 }
 0x21e   :  { %v742_v42 = vpop.f32.mrb[5].mxu1 }
 0x21f   :  { %v744_v43 = vpop.f32.mrb[6].mxu1 }
 0x220   :  { %v746_v44 = vpop.f32.mrb[7].mxu1 }
 0x225   :  { %v750_v45 = vpop.f32.mrb[8].mxu1 }
 0x226   :  { %v769_v46 = vmax.f32 %v730_v37, %v750_v45  ;;  %v752_v47 = vpop.f32.mrb[9].mxu1  ;;  %v1756_v37 = vld [vmem:[%s2241_s7 + $0x30] sm:$0xff]  }
 0x227   :  { %v770_v49 = vmax.f32 %v732_v38, %v752_v47  ;;  %v754_v50 = vpop.f32.mrb[10].mxu1  ;;  %v1757_v38 = vld [vmem:[%s2241_s7 + $0x38] sm:$0xff]  }
 0x228   :  { %v771_v52 = vmax.f32 %v734_v39, %v754_v50  ;;  %v756_v53 = vpop.f32.mrb[11].mxu1 }
 0x229   :  { %v777_v54 = vmax.f32 %v769_v46, %v770_v49  ;;  %v772_v55 = vmax.f32 %v736_v40, %v756_v53 }
 0x22b   :  { %v788_v56 = vadd.f32 %v1422_v51, %v777_v54  ;;  %v778_v57 = vmax.f32 %v771_v52, %v772_v55  ;;  %v1455_v54 = vld [vmem:[%s2242_s6] ss:$0 sm:$0xff] }
 0x22d   :  { %v789_v58 = vadd.f32 %v1422_v51, %v778_v57  ;;  %v760_v59 = vpop.f32.mrb[12].mxu1  ;;  %v792_v62 = vmax.f32 %v788_v56, 0.0 }
 0x22e   :  { %v773_v60 = vmax.f32 %v740_v41, %v760_v59  ;;  %v762_v61 = vpop.f32.mrb[13].mxu1 }
 0x22f   :  { %v793_v63 = vmax.f32 %v789_v58, 0.0  ;;  %v774_v0 = vmax.f32 %v742_v42, %v762_v61  ;;  %v764_v6 = vpop.f32.mrb[14].mxu1 }
 0x230   :  { %v775_v2 = vmax.f32 %v744_v43, %v764_v6  ;;  %v766_v7 = vpop.f32.mrb[15].mxu1 }
 0x231   :  { %v796_v8 = vpack.c.bf16 %v793_v63, %v792_v62  ;;  %v779_v3 = vmax.f32 %v773_v60, %v774_v0  ;;  %v776_v9 = vmax.f32 %v746_v44, %v766_v7  ;;  %v1456_v62 = vld [vmem:[%s2243_s8] ss:$0 sm:$0xff] }
 0x233   :  { %v831_v5 = vrot.slane %v796_v8, 4  ;;  %v790_v10 = vadd.f32 %v1422_v51, %v779_v3  ;;  %v780_v12 = vmax.f32 %v775_v2, %v776_v9 }
 0x235   :  { %v791_v13 = vadd.f32 %v1422_v51, %v780_v12  ;;  %1527 = vmatmul.mubr.bf16.vlgmr.msra.gmra.mrb[32].mxu0 %v831_v5  ;;  %v794_v14 = vmax.f32 %v790_v10, 0.0 }
 0x236   :  { %1531 = vmatpush3.bf16.msra.mxu0 %v1733_v4  ;;  %1546 = vmatprep.mubr.msk.bf16.mxu0 %vm1760_vm3, %v1759_v48 }
 0x237   :  { %v795_v15 = vmax.f32 %v791_v13, 0.0  ;;  %1532 = vmatprep.subr.bf16.mxu0 %v1759_v48 }
 0x239   :  { %v797_v16 = vpack.c.bf16 %v795_v15, %v794_v14 }
 0x23a   :  { %1533 = vmatpush3.bf16.msra.mxu0 %v1735_v11 }
 0x23b   :  { %1567 = vmatmul.mubr.bf16.vlgmr.msra.gmra.mrb[16].mxu1 %v797_v16  ;;  %1534 = vmatprep.subr.bf16.mxu0 %v1759_v48  ;;  %v1131_v30 = vrot.slane %v797_v16, 4 }
 0x23c   :  { %1606 = vmatprep.mubr.msk.bf16.mxu1 %vm1760_vm3, %v1759_v48  ;;  %1591 = vmatpush3.bf16.msra.mxu1 %v1750_v31 }
 0x23d   :  { %1592 = vmatprep.subr.bf16.mxu1 %v1759_v48 }
 0x23e   :  { %1535 = vmatpush3.bf16.msra.mxu0 %v1736_v17 }
 0x23f   :  { %1536 = vmatprep.subr.bf16.mxu0 %v1759_v48 }
 0x240   :  { %1593 = vmatpush3.bf16.msra.mxu1 %v1751_v32 }
 0x241   :  { %1594 = vmatprep.subr.bf16.mxu1 %v1759_v48 }
 0x242   :  { %1537 = vmatpush3.bf16.msra.mxu0 %v1737_v18 }
 0x243   :  { %1538 = vmatprep.subr.bf16.mxu0 %v1759_v48 }
 0x244   :  { %1595 = vmatpush3.bf16.msra.mxu1 %v1752_v33 }
 0x245   :  { %1596 = vmatprep.subr.bf16.mxu1 %v1759_v48 }
 0x246   :  { %1539 = vmatpush3.bf16.msra.mxu0 %v1738_v19 }
 0x247   :  { %1540 = vmatprep.subr.bf16.mxu0 %v1759_v48 }
 0x248   :  { %1597 = vmatpush3.bf16.msra.mxu1 %v1753_v34 }
 0x249   :  { %1598 = vmatprep.subr.bf16.mxu1 %v1759_v48 }
 0x24a   :  { %1541 = vmatpush3.bf16.msra.mxu0 %v1739_v20 }
 0x24b   :  { %1542 = vmatprep.subr.bf16.mxu0 %v1759_v48 }
 0x24c   :  { %1599 = vmatpush3.bf16.msra.mxu1 %v1754_v35 }
 0x24d   :  { %1600 = vmatprep.subr.bf16.mxu1 %v1759_v48 }
 0x24e   :  { %1543 = vmatpush3.bf16.msra.mxu0 %v1740_v21 }
 0x24f   :  { %1544 = vmatprep.subr.bf16.mxu0 %v1759_v48 }
 0x250   :  { %1601 = vmatpush3.bf16.msra.mxu1 %v1755_v36 }
 0x251   :  { %1602 = vmatprep.subr.bf16.mxu1 %v1759_v48 }
 0x252   :  { %1545 = vmatpush3.bf16.msra.mxu0 %v1741_v22 }
 0x253   :  { %1570 = vmatprep.subr.bf16.mxu0 %v1759_v48 }
 0x254   :  { %1603 = vmatpush3.bf16.msra.mxu1 %v1756_v37 }
 0x255   :  { %1547 = vmatmul.mubr.bf16.vlgmr.msra.gmra.mrb[36].mxu0 %v796_v8  ;;  %1604 = vmatprep.subr.bf16.mxu1 %v1759_v48 }
 0x256   :  { %1571 = vmatpush3.bf16.msra.mxu0 %v1742_v23  ;;  %1586 = vmatprep.mubr.msk.bf16.mxu0 %vm1760_vm3, %v1759_v48 }
 0x257   :  { %1572 = vmatprep.subr.bf16.mxu0 %v1759_v48 }
 0x258   :  { %1605 = vmatpush3.bf16.msra.mxu1 %v1757_v38 }
 0x25a   :  { %1573 = vmatpush3.bf16.msra.mxu0 %v1743_v24 }
 0x25b   :  { %1574 = vmatprep.subr.bf16.mxu0 %v1759_v48 }
 0x25e   :  { %1575 = vmatpush3.bf16.msra.mxu0 %v1744_v25 }
 0x25f   :  { %1576 = vmatprep.subr.bf16.mxu0 %v1759_v48 }
 0x262   :  { %1577 = vmatpush3.bf16.msra.mxu0 %v1745_v26 }
 0x263   :  { %1578 = vmatprep.subr.bf16.mxu0 %v1759_v48 }
 0x266   :  { %1579 = vmatpush3.bf16.msra.mxu0 %v1746_v27 }
 0x267   :  { %1580 = vmatprep.subr.bf16.mxu0 %v1759_v48 }
 0x26a   :  { %1581 = vmatpush3.bf16.msra.mxu0 %v1747_v1 }
 0x26b   :  { %1582 = vmatprep.subr.bf16.mxu0 %v1759_v48 }
 0x26e   :  { %1583 = vmatpush3.bf16.msra.mxu0 %v1748_v28 }
 0x26f   :  { %1584 = vmatprep.subr.bf16.mxu0 %v1759_v48 }
 0x272   :  { %1585 = vmatpush3.bf16.msra.mxu0 %v1749_v29 }
 0x275   :  { %1587 = vmatmul.mubr.bf16.vlgmr.msra.gmra.mrb[40].mxu0 %v1131_v30 }
 0x308   :  { %v915_v39 = vpop.f32.mrb[32].mxu0 }
 0x309   :  { %v1528_v40 = vpop.f32.mrb[33].mxu0 }
 0x30a   :  { %v918_v41 = vpop.f32.mrb[34].mxu0 }
 0x30b   :  { %v1529_v42 = vpop.f32.mrb[35].mxu0 }
 0x30e   :  { %v1107_v43 = vpop.f32.mrb[16].mxu1 }
 0x30f   :  { %v1568_v44 = vpop.f32.mrb[17].mxu1 }
 0x310   :  { %v1110_v45 = vpop.f32.mrb[18].mxu1 }
 0x311   :  { %v1569_v46 = vpop.f32.mrb[19].mxu1 }
 0x328   :  { %v1003_v47 = vpop.f32.mrb[36].mxu0 }
 0x329   :  { %v1004_v49 = vadd.f32 %v1003_v47, %v915_v39  ;;  %v1548_v50 = vpop.f32.mrb[37].mxu0 }
 0x32a   :  { %v1006_v51 = vpop.f32.mrb[38].mxu0 }
 0x32b   :  { %v1549_v52 = vpop.f32.mrb[39].mxu0  ;;  %v1113_v53 = vadd.f32 %v1107_v43, %v1004_v49 }
 0x348   :  { %v1215_v48 = vpop.f32.mrb[40].mxu0 }
 0x349   :  { %v1221_v55 = vadd.f32 %v1215_v48, %v1113_v53  ;;  %v1588_v56 = vpop.f32.mrb[41].mxu0 }
 0x34a   :  { %v1218_v57 = vpop.f32.mrb[42].mxu0 }
 0x34b   :  { %v1229_v58 = vadd.f32 %v1455_v54, %v1221_v55  ;;  %v1589_v59 = vpop.f32.mrb[43].mxu0 }
 0x34d   :  { %v1230_v60 = vmax.f32 %v1229_v58, 0.0 }
 0x34f   :  { %v1231_v61 = vpack.c.bf16 %v1230_v60, %v1230_v60 }
 0x351   :  { %1607 = vmatmul.mubr.bf16.vlgmr.msra.gmra.mrb[20].mxu1 %v1231_v61 }
 0x424   :  { %v1337_v63 = vpop.f32.mrb[20].mxu1 }
 0x425   :  { %v1338_v0 = vadd.f32 %v1456_v62, %v1337_v63  ;;  %v1608_v6 = vpop.f32.mrb[21].mxu1 }
 0x426   :  { %v1340_v2 = vpop.f32.mrb[22].mxu1 }
 0x427   :  { %1343 = vst [vmem:[%s2244_s9] sm:$0xff] %v1338_v0  ;;  %v1609_v7 = vpop.f32.mrb[23].mxu1 }

</bundles_post_ra>
